<compile_context>
chip_gen: v7x
topology: tpu7x:2x2x1
jax: 0.10.0
libtpu: 0.0.40
codegen_flags: <defaults>
</compile_context>

<pallas_src>
import functools

import jax
import jax.numpy as jnp
from jax.experimental import pallas as pl
from jax.experimental.pallas import tpu as pltpu


def _crowd_counter_kernel(w_ref, b_ref, x_ref, gt_ref, dm_ref, part_ref, acc_ref,
                          *, hw_valid, needs_mask):
    # w_ref   : (C,)        f32 SMEM  -- 1x1 conv weight (density head)
    # b_ref   : (1,)        f32 SMEM  -- 1x1 conv bias
    # x_ref   : (C, TR, 128)          -- per-channel spatial tile (lanes = pixels)
    # gt_ref  : (TR, 128)             -- ground-truth density tile
    # dm_ref  : (TR, 128)             -- output density-map tile
    # part_ref: (8, 128)    f32       -- per-batch sum-of-squares (written at last tile)
    # acc_ref : (8, 128)    f32 VMEM  -- running squared-error accumulator
    t = pl.program_id(1)
    n_tiles = pl.num_programs(1)
    c_dim, tr, lanes = x_ref.shape

    @pl.when(t == 0)
    def _():
        acc_ref[...] = jnp.zeros_like(acc_ref)

    # 1x1 conv as C VPU FMAs on dense (TR, 128) slabs, with independent partial
    # accumulators so large C does not serialize on a single add chain.  No MXU.
    n_acc = min(4, c_dim)
    parts = [None] * n_acc
    for c in range(c_dim):
        term = w_ref[c] * x_ref[c].astype(jnp.float32)
        a = c % n_acc
        parts[a] = term if parts[a] is None else parts[a] + term
    pred = parts[0]
    for a in range(1, n_acc):
        pred = pred + parts[a]
    pred = pred + b_ref[0]

    # Lane- and sublane-dense density-map store.
    dm_ref[...] = pred.astype(dm_ref.dtype)

    # Fused MSE partial: accumulate squared error into an (8, 128) f32 vector
    # accumulator (no per-step cross-lane-to-scalar reduce).
    diff = pred - gt_ref[...].astype(jnp.float32)
    if needs_mask:
        row = jax.lax.broadcasted_iota(jnp.int32, (tr, lanes), 0)
        lane = jax.lax.broadcasted_iota(jnp.int32, (tr, lanes), 1)
        flat = (t * tr + row) * lanes + lane
        diff = jnp.where(flat < hw_valid, diff, 0.0)
    sq = diff * diff
    if tr % 8 == 0:
        acc_ref[...] += sq.reshape(tr // 8, 8, lanes).sum(axis=0)
    else:
        acc_ref[0:1, :] += sq.sum(axis=0, keepdims=True)

    @pl.when(t == n_tiles - 1)
    def _():
        part_ref[...] = acc_ref[...]


def _pick_row_tile(rows, max_rows, sub=8):
    """Largest multiple-of-`sub` divisor of `rows` that is <= max_rows.

    Falls back to the full extent (legal as a full block) or, failing that, to
    the largest divisor that fits within max_rows."""
    limit = min(rows, max(1, max_rows))
    best = None
    d = sub
    while d <= limit:
        if rows % d == 0:
            best = d
        d += sub
    if best is not None:
        return best
    if rows <= max(1, max_rows):
        return rows
    best = 1
    d = 1
    while d <= limit:
        if rows % d == 0:
            best = d
        d += 1
    return best


# Conservative across generations: usage budget ~40 MiB, scoped limit 48 MiB
# (< v7x's 64 MiB physical per TC; well under v5e/v6e's 128 MiB, and above
#  v5e's 16 MiB default scoped limit).
_VMEM_BUDGET_BYTES = 40 * 1024 * 1024
_VMEM_LIMIT_BYTES = 48 * 1024 * 1024


def crowd_counter_forward(img, gt_map, w, b):
    """Equivalent of CrowdCounter.forward(img, gt_map).

    Returns (density_map [N, 1, H, W], loss_mse scalar)."""
    N, C, H, W = img.shape
    HW = H * W

    x_isz = jnp.dtype(img.dtype).itemsize
    g_isz = jnp.dtype(gt_map.dtype).itemsize
    out_dtype = img.dtype if jnp.issubdtype(img.dtype, jnp.floating) else jnp.float32
    o_isz = jnp.dtype(out_dtype).itemsize

    # Sublane granularity: 8 rows for 32-bit, 16 for 16-bit, 32 for 8-bit dtypes.
    sub = max(8, 32 // max(1, min(x_isz, g_isz, o_isz)))

    # Per row of 128 pixels: double-buffered x/gt/dm tiles + (tiny) f32 scratch.
    per_row = 2 * 128 * (C * x_isz + g_isz + o_isz) + 4 * 128
    max_rows = max(1, _VMEM_BUDGET_BYTES // per_row)

    # Pad the flattened spatial axis to a multiple of 128 (lane-dense tiles).
    hw_pad = pl.cdiv(HW, 128) * 128
    rows = hw_pad // 128
    # If the row count is not sublane-aligned AND too big for one full block,
    # pad further so a sublane-aligned tile exists.
    if rows % sub != 0 and rows > max_rows:
        hw_pad = pl.cdiv(HW, sub * 128) * (sub * 128)
        rows = hw_pad // 128

    x3 = img.reshape(N, C, HW)
    gt3 = gt_map.reshape(N, HW)
    if hw_pad != HW:
        pad = hw_pad - HW
        x3 = jnp.pad(x3, ((0, 0), (0, 0), (0, pad)))
        gt3 = jnp.pad(gt3, ((0, 0), (0, pad)))
    # Free reshapes only -- no transpose, no dtype upcast pass before the kernel.
    x4 = x3.reshape(N, C, rows, 128)
    gt4 = gt3.reshape(N, rows, 128)

    TR = _pick_row_tile(rows, max_rows, sub=sub)
    n_tiles = rows // TR
    needs_mask = hw_pad != HW

    w = w.astype(jnp.float32).reshape(C)
    b = b.astype(jnp.float32).reshape(1)

    kernel = functools.partial(_crowd_counter_kernel,
                               hw_valid=HW, needs_mask=needs_mask)

    dm4, partials = pl.pallas_call(
        kernel,
        grid=(N, n_tiles),
        out_shape=(
            jax.ShapeDtypeStruct((N, rows, 128), out_dtype),
            jax.ShapeDtypeStruct((N, 8, 128), jnp.float32),
        ),
        in_specs=[
            pl.BlockSpec(memory_space=pltpu.SMEM),                        # w
            pl.BlockSpec(memory_space=pltpu.SMEM),                        # b
            pl.BlockSpec((None, C, TR, 128), lambda n, t: (n, 0, t, 0)),  # img view
            pl.BlockSpec((None, TR, 128), lambda n, t: (n, t, 0)),        # gt view
        ],
        out_specs=(
            pl.BlockSpec((None, TR, 128), lambda n, t: (n, t, 0)),        # density map
            pl.BlockSpec((None, 8, 128), lambda n, t: (n, 0, 0)),         # loss partials
        ),
        scratch_shapes=[pltpu.VMEM((8, 128), jnp.float32)],               # sq-err acc
        compiler_params=pltpu.CompilerParams(
            # Batch axis is independent -> "parallel" (shards across both v7x
            # TensorCores); spatial-tile axis carries the loss accumulator ->
            # "arbitrary".
            dimension_semantics=("parallel", "arbitrary"),
            vmem_limit_bytes=_VMEM_LIMIT_BYTES,
        ),
    )(w, b, x4, gt4)

    dm_flat = dm4.reshape(N, hw_pad)
    if needs_mask:
        dm_flat = dm_flat[:, :HW]
    density_map = dm_flat.reshape(N, 1, H, W)

    # MSELoss(density_map.squeeze(), gt_map.squeeze()) == sum(sq diffs) / (N*H*W).
    loss_mse = jnp.sum(partials) * (1.0 / float(N * HW))
    return density_map, loss_mse


def _reference(img, gt_map, w, b):
    dm = jnp.einsum("nchw,c->nhw", img.astype(jnp.float32), w) + b[0]
    dm = dm[:, None, :, :]
    loss = jnp.mean((jnp.squeeze(dm) - jnp.squeeze(gt_map.astype(jnp.float32))) ** 2)
    return dm, loss


if __name__ == "__main__":
    # Small shapes consistent with the forward: img NCHW, gt_map NHW density.
    N, C, H, W = 2, 4, 16, 16

    key = jax.random.PRNGKey(0)
    k_img, k_gt, k_w, k_b = jax.random.split(key, 4)

    img = jax.random.normal(k_img, (N, C, H, W), dtype=jnp.float32)
    gt_map = jax.random.uniform(k_gt, (N, H, W), dtype=jnp.float32)

    # Deterministic synthetic parameters for the stand-in density head.
    w = jax.random.normal(k_w, (C,), dtype=jnp.float32) * 0.1
    b = jax.random.normal(k_b, (1,), dtype=jnp.float32) * 0.01

    density_map, loss_mse = crowd_counter_forward(img, gt_map, w, b)
    density_map = jax.block_until_ready(density_map)
    loss_mse = jax.block_until_ready(loss_mse)

    dm_ref, loss_ref = _reference(img, gt_map, w, b)
    assert density_map.shape == (N, 1, H, W)
    assert jnp.allclose(density_map, dm_ref, atol=1e-5, rtol=1e-5)
    assert jnp.allclose(loss_mse, loss_ref, atol=1e-5, rtol=1e-5)

    print("KERNEL_OK")
</pallas_src>

<mosaic_0001>
module attributes {stable_mosaic.version = 11 : i64} {
  func.func @_crowd_counter_kernel(%arg0: i32, %arg1: i32, %arg2: memref<4xf32, #tpu.memory_space<smem>>, %arg3: memref<1xf32, #tpu.memory_space<smem>>, %arg4: memref<1x4x2x128xf32, #tpu.memory_space<vmem>>, %arg5: memref<1x2x128xf32, #tpu.memory_space<vmem>>, %arg6: memref<1x2x128xf32, #tpu.memory_space<vmem>>, %arg7: memref<1x8x128xf32, #tpu.memory_space<vmem>>, %arg8: memref<8x128xf32, #tpu.memory_space<vmem>>) attributes {dimension_semantics = [#tpu.dimension_semantics<parallel>, #tpu.dimension_semantics<arbitrary>], iteration_bounds = array<i64: 2, 1>, scalar_prefetch = 0 : i64, scratch_operands = 1 : i64, tpu.core_type = #tpu.core_type<tc>, window_params = [{transform_indices = @transform_0, window_bounds = array<i64: 4>}, {transform_indices = @transform_1, window_bounds = array<i64: 1>}, {transform_indices = @transform_2, window_bounds = array<i64: 1, 4, 2, 128>}, {transform_indices = @transform_3, window_bounds = array<i64: 1, 2, 128>}, {transform_indices = @transform_4, window_bounds = array<i64: 1, 2, 128>}, {transform_indices = @transform_5, window_bounds = array<i64: 1, 8, 128>}]} {
    %c0_i32 = arith.constant 0 : i32
    %0 = arith.cmpi eq, %arg1, %c0_i32 : i32
    %1 = arith.extui %0 : i1 to i32
    %c0_i32_0 = arith.constant 0 : i32
    %2 = arith.cmpi ne, %1, %c0_i32_0 : i32
    scf.if %2 {
      %cst_30 = arith.constant 0.000000e+00 : f32
      %44 = vector.broadcast %cst_30 : f32 to vector<8x128xf32>
      %c0_31 = arith.constant 0 : index
      %c0_32 = arith.constant 0 : index
      %45 = vector.load %arg8[%c0_31, %c0_32] : memref<8x128xf32, #tpu.memory_space<vmem>>, vector<8x128xf32>
      tpu.vector_store %arg8[%c0_31, %c0_32], %44 {strides = array<i32>} : memref<8x128xf32, #tpu.memory_space<vmem>>, vector<8x128xf32>,
    } else {
    }
    %c0 = arith.constant 0 : index
    %3 = memref.load %arg2[%c0] : memref<4xf32, #tpu.memory_space<smem>>
    %c0_1 = arith.constant 0 : index
    %c0_2 = arith.constant 0 : index
    %c0_3 = arith.constant 0 : index
    %c0_4 = arith.constant 0 : index
    %4 = vector.load %arg4[%c0_1, %c0_2, %c0_3, %c0_4] : memref<1x4x2x128xf32, #tpu.memory_space<vmem>>, vector<1x1x2x128xf32>
    %5 = vector.shape_cast %4 : vector<1x1x2x128xf32> to vector<2x128xf32>
    %6 = vector.broadcast %3 : f32 to vector<2x128xf32>
    %7 = arith.mulf %6, %5 : vector<2x128xf32>
    %c1 = arith.constant 1 : index
    %8 = memref.load %arg2[%c1] : memref<4xf32, #tpu.memory_space<smem>>
    %c0_5 = arith.constant 0 : index
    %c1_6 = arith.constant 1 : index
    %c0_7 = arith.constant 0 : index
    %c0_8 = arith.constant 0 : index
    %9 = vector.load %arg4[%c0_5, %c1_6, %c0_7, %c0_8] : memref<1x4x2x128xf32, #tpu.memory_space<vmem>>, vector<1x1x2x128xf32>
    %10 = vector.shape_cast %9 : vector<1x1x2x128xf32> to vector<2x128xf32>
    %11 = vector.broadcast %8 : f32 to vector<2x128xf32>
    %12 = arith.mulf %11, %10 : vector<2x128xf32>
    %c2 = arith.constant 2 : index
    %13 = memref.load %arg2[%c2] : memref<4xf32, #tpu.memory_space<smem>>
    %c0_9 = arith.constant 0 : index
    %c2_10 = arith.constant 2 : index
    %c0_11 = arith.constant 0 : index
    %c0_12 = arith.constant 0 : index
    %14 = vector.load %arg4[%c0_9, %c2_10, %c0_11, %c0_12] : memref<1x4x2x128xf32, #tpu.memory_space<vmem>>, vector<1x1x2x128xf32>
    %15 = vector.shape_cast %14 : vector<1x1x2x128xf32> to vector<2x128xf32>
    %16 = vector.broadcast %13 : f32 to vector<2x128xf32>
    %17 = arith.mulf %16, %15 : vector<2x128xf32>
    %c3 = arith.constant 3 : index
    %18 = memref.load %arg2[%c3] : memref<4xf32, #tpu.memory_space<smem>>
    %c0_13 = arith.constant 0 : index
    %c3_14 = arith.constant 3 : index
    %c0_15 = arith.constant 0 : index
    %c0_16 = arith.constant 0 : index
    %19 = vector.load %arg4[%c0_13, %c3_14, %c0_15, %c0_16] : memref<1x4x2x128xf32, #tpu.memory_space<vmem>>, vector<1x1x2x128xf32>
    %20 = vector.shape_cast %19 : vector<1x1x2x128xf32> to vector<2x128xf32>
    %21 = vector.broadcast %18 : f32 to vector<2x128xf32>
    %22 = arith.mulf %21, %20 : vector<2x128xf32>
    %23 = arith.addf %7, %12 : vector<2x128xf32>
    %24 = arith.addf %23, %17 : vector<2x128xf32>
    %25 = arith.addf %24, %22 : vector<2x128xf32>
    %c0_17 = arith.constant 0 : index
    %26 = memref.load %arg3[%c0_17] : memref<1xf32, #tpu.memory_space<smem>>
    %27 = vector.broadcast %26 : f32 to vector<2x128xf32>
    %28 = arith.addf %25, %27 : vector<2x128xf32>
    %c0_18 = arith.constant 0 : index
    %c0_19 = arith.constant 0 : index
    %c0_20 = arith.constant 0 : index
    %29 = vector.load %arg6[%c0_18, %c0_19, %c0_20] : memref<1x2x128xf32, #tpu.memory_space<vmem>>, vector<1x2x128xf32>
    %30 = vector.shape_cast %29 : vector<1x2x128xf32> to vector<2x128xf32>
    %31 = vector.shape_cast %28 : vector<2x128xf32> to vector<1x2x128xf32>
    tpu.vector_store %arg6[%c0_18, %c0_19, %c0_20], %31 {strides = array<i32>} : memref<1x2x128xf32, #tpu.memory_space<vmem>>, vector<1x2x128xf32>,
    %c0_21 = arith.constant 0 : index
    %c0_22 = arith.constant 0 : index
    %c0_23 = arith.constant 0 : index
    %32 = vector.load %arg5[%c0_21, %c0_22, %c0_23] : memref<1x2x128xf32, #tpu.memory_space<vmem>>, vector<1x2x128xf32>
    %33 = vector.shape_cast %32 : vector<1x2x128xf32> to vector<2x128xf32>
    %34 = arith.subf %28, %33 : vector<2x128xf32>
    %35 = arith.mulf %34, %34 : vector<2x128xf32>
    %c0_24 = arith.constant 0 : index
    %c0_25 = arith.constant 0 : index
    %36 = vector.load %arg8[%c0_24, %c0_25] : memref<8x128xf32, #tpu.memory_space<vmem>>, vector<1x128xf32>
    %cst = arith.constant dense<0.000000e+00> : vector<128xf32>
    %37 = vector.multi_reduction <add>, %35, %cst [0] : vector<2x128xf32> to vector<128xf32>
    %38 = vector.shape_cast %37 : vector<128xf32> to vector<1x128xf32>
    %39 = arith.addf %36, %38 : vector<1x128xf32>
    %c0_26 = arith.constant 0 : index
    %c0_27 = arith.constant 0 : index
    %40 = vector.load %arg8[%c0_26, %c0_27] : memref<8x128xf32, #tpu.memory_space<vmem>>, vector<1x128xf32>
    tpu.vector_store %arg8[%c0_26, %c0_27], %39 {strides = array<i32>} : memref<8x128xf32, #tpu.memory_space<vmem>>, vector<1x128xf32>,
    %c0_i32_28 = arith.constant 0 : i32
    %41 = arith.cmpi eq, %arg1, %c0_i32_28 : i32
    %42 = arith.extui %41 : i1 to i32
    %c0_i32_29 = arith.constant 0 : i32
    %43 = arith.cmpi ne, %42, %c0_i32_29 : i32
    scf.if %43 {
      %c0_30 = arith.constant 0 : index
      %c0_31 = arith.constant 0 : index
      %44 = vector.load %arg8[%c0_30, %c0_31] : memref<8x128xf32, #tpu.memory_space<vmem>>, vector<8x128xf32>
      %c0_32 = arith.constant 0 : index
      %c0_33 = arith.constant 0 : index
      %c0_34 = arith.constant 0 : index
      %45 = vector.load %arg7[%c0_32, %c0_33, %c0_34] : memref<1x8x128xf32, #tpu.memory_space<vmem>>, vector<1x8x128xf32>
      %46 = vector.shape_cast %45 : vector<1x8x128xf32> to vector<8x128xf32>
      %47 = vector.shape_cast %44 : vector<8x128xf32> to vector<1x8x128xf32>
      tpu.vector_store %arg7[%c0_32, %c0_33, %c0_34], %47 {strides = array<i32>} : memref<1x8x128xf32, #tpu.memory_space<vmem>>, vector<1x8x128xf32>,
    } else {
    }
    return
  }
  func.func @transform_0(%arg0: i32, %arg1: i32) -> i32 {
    %c0_i32 = arith.constant 0 : i32
    %c0_i32_0 = arith.constant 0 : i32
    return %c0_i32 : i32
  }
  func.func @transform_1(%arg0: i32, %arg1: i32) -> i32 {
    %c0_i32 = arith.constant 0 : i32
    %c0_i32_0 = arith.constant 0 : i32
    return %c0_i32 : i32
  }
  func.func @transform_2(%arg0: i32, %arg1: i32) -> (i32, i32, i32, i32) {
    %c0_i32 = arith.constant 0 : i32
    %c0_i32_0 = arith.constant 0 : i32
    %c0_i32_1 = arith.constant 0 : i32
    return %arg0, %c0_i32, %arg1, %c0_i32_0 : i32, i32, i32, i32
  }
  func.func @transform_3(%arg0: i32, %arg1: i32) -> (i32, i32, i32) {
    %c0_i32 = arith.constant 0 : i32
    %c0_i32_0 = arith.constant 0 : i32
    return %arg0, %arg1, %c0_i32 : i32, i32, i32
  }
  func.func @transform_4(%arg0: i32, %arg1: i32) -> (i32, i32, i32) {
    %c0_i32 = arith.constant 0 : i32
    %c0_i32_0 = arith.constant 0 : i32
    return %arg0, %arg1, %c0_i32 : i32, i32, i32
  }
  func.func @transform_5(%arg0: i32, %arg1: i32) -> (i32, i32, i32) {
    %c0_i32 = arith.constant 0 : i32
    %c0_i32_0 = arith.constant 0 : i32
    %c0_i32_1 = arith.constant 0 : i32
    return %arg0, %c0_i32, %c0_i32_0 : i32, i32, i32
  }
}

</mosaic_0001>

<bundles_post_ra>
// kernel: tpu_custom_call.1
= control target key start
LH: loop header
LB: loop body
LE: loop exit
PB: predicated region body
PF: predicated region fallthrough
CT: control target
= control target key end

     0   :  { %s1101_s0 = inlined_call_operand.vmem [shape: f32[4], index: 0, kind: input, shape index: {}]   ;;  %s1102_s1 = inlined_call_operand.<no memory space> [shape: f32[1], index: 1, kind: input, shape index: {}]   ;;  %s1103_s2 = inlined_call_operand.hbm [shape: f32[2,4,2,128], index: 2, kind: input, shape index: {}]   ;;  %s1104_s3 = inlined_call_operand.vmem [shape: f32[2,2,128], index: 3, kind: input, shape index: {}]   ;;  %s1105_s4 = inlined_call_operand.hbm [shape: f32[2,2,128], index: 4, kind: output, shape index: {0}]   ;;  %s1106_s5 = inlined_call_operand.hbm [shape: f32[2,8,128], index: 5, kind: output, shape index: {1}]  }
   0x1   :  { %11 = sst [smem:[#allocation3]] %s1102_s1 }
   0x2   :  { %12 = vsyncpa [#allocation7], 0 }
   0x3   :  { %13 = vsyncpa [#allocation5], 0 }
   0x4   :  { %15 = vsyncpa [#allocation5 + $0x1], 0 }
   0x5   :  { %16 = vsyncpa [#allocation6], 0 }
   0x6   :  { %18 = vsyncpa [#allocation6 + $0x1], 0 }
   0x7   :  { %19 = vsyncpa [#allocation11], 0 }
   0x8   :  { %21 = vsyncpa [#allocation11 + $0x1], 0  ;;  %s850_s20 = smov 0   ;;  %s852_s21 = smov 0  }
   0x9   :  { %s854_s22 = smov 0   ;;  %s856_s23 = smov 0  }
   0xa   :  { %s858_s24 = smov 0   ;;  %s860_s25 = smov 0  }
   0xb LB: > { %s537_s1 = sadd.s32 4294967295, %s808_s25   ;;  %s538_s26 = sadd.s32 4294967294, %s808_s25   ;;  %s808_s25 = sphi %s860_s25, %s27_s25   ;;  %s804_s24 = sphi %s858_s24, %s1129_s24   ;;  %s800_s23 = sphi %s856_s23, %s1128_s23   ;;  %s796_s22 = sphi %s854_s22, %s1127_s22   ;;  %s792_s21 = sphi %s852_s21, %s1126_s21   ;;  %s788_s20 = sphi %s850_s20, %s1125_s20  }
   0xc   : > { %s90_s27 = sadd.s32 1, %s796_s22  ;;  %p97_p0 = scmp.ne.s32.totalorder %s796_s22, %s792_s21 }
   0xd   : > { %p98_p1 = scmp.eq.s32.totalorder %s808_s25, 0  ;;  %p103_p2 = scmp.ne.s32.totalorder %s792_s21, %s788_s20 }
   0xe   : > { %p888_p3 = scmp.eq.s32.totalorder %s537_s1, 0  ;;  %p157_p4 = scmp.eq.s32.totalorder %s537_s1, 1 }
   0xf   : > { %p892_p5 = por %p98_p1, %p97_p0  ;;  %p163_p6 = scmp.eq.s32.totalorder %s538_s26, 1 }
  0x10   : > { %s1111_s28 = scalar_select %p888_p3, 1, 0 }
  0x11   : > { %p898_p7 = por %p888_p3, %p103_p2  ;;  %p902_p8 = por %p157_p4, %p97_p0 }
  0x12   : > { %p906_p9 = por %p163_p6, %p103_p2  ;;  %p539_p10 = scmp.ge.s32.totalorder %s808_s25, 1 }
  0x13   : > { %s1113_s30 = scalar_select %p898_p7, 1, 0 }
  0x14   : > { %s1114_s6 = scalar_select %p902_p8, 1, 0 }
  0x15   : > { %s1115_s7 = scalar_select %p906_p9, 1, 0 }
  0x16   : > { %p196_p11 = scmp.lt.s32.totalorder %s808_s25, 3  ;;  %s209_s10 = sshll.u32 %s1101_s0, 4  ;;  %s210_s10 = int_to_ptr.vmem [resolvable:$true] %s209_s10 }
  0x17   : > { %p590_p0 = scmp.lt.s32.totalorder %s808_s25, 2  ;;  %s39_s14 = sadd.s32 1, %s804_s24 }
  0x18   : > { %p915_p12 = pnand %p539_p10, %p196_p11  ;;  %p936_p6 = scmp.ge.s32.totalorder %s39_s14, 2 }
  0x19   : > { %p925_p2 = pnand %p590_p0, %p892_p5  ;;  %s223_s16 = sand.u32 1, %s796_s22  }
  0x1a   : > { %p574_p1 = pneg %p915_p12  ;;  %s645_s17 = scalar_lea.vmem %s210_s10, 16 }
  0x1b   : > { %p646_p10 = scmp.ne.s32.totalorder %s210_s10, %s645_s17  ;;  %p653_p13 = scmp.lt.s32.totalorder %s210_s10, %s210_s10 }
  0x1c   : > { %p931_p4 = pnand %p574_p1, %p888_p3  ;;  %p654_p9 = scmp.lt.s32.totalorder %s645_s17, %s645_s17 }
  0x1e   : > { %p647_p11 = pneg %p931_p4  ;;  %p655_p8 = por %p654_p9, %p653_p13 }
  0x20   : > { %p648_p5 = pnand %p647_p11, %p646_p10 }
  0x22   : > { %p649_p0 = pneg %p648_p5 }
  0x24   : > { %p656_p1 = pnand %p655_p8, %p649_p0 }
  0x26   : > { %659 = shalt.err (!%p656_p1)
}
  0x27   : > { %s810_s18 = smov [#allocation4]   ;;  %s1131_s14 = smov (%p936_p6, %s39_s14), 0 }
  0x28   : > { %577 = dma.vmem_to_smem (!%p931_p4), %s210_s10, 16, %s810_s18, [#allocation7]  }
  0x29   : > { %s542_s19 = sshll.u32 %s223_s16, 3  ;;  %s85_s1 = ssub.s32 %s804_s24, %s1131_s14 }
  0x2a   : > { %p88_p9 = scmp.eq.s32.totalorder %s85_s1, 0  ;;  %s563_s26 = sshll.u32 %s804_s24, 7 }
  0x2b   : > { %s955_s9 = scalar_lea.hbm %s1103_s2, %s563_s26  ;;  %s227_s13 = scalar_lea.vmem [#allocation8], %s542_s19 }
  0x2c   : > { %s235_s17 = sshll.u32 %s227_s13, 4  ;;  %s964_s15 = scalar_lea.sflag [#allocation5], %s223_s16  ;;  %s962_s17 = int_to_ptr.vmem [resolvable:$true] %s235_s17 }
  0x2d   : > { %s960_s10 = scalar_select %p88_p9, %s796_s22, %s90_s27  }
  0x2e   : > { %s660_s18 = scalar_lea.hbm %s955_s9, 128  ;;  %p662_p13 = pneg %p925_p2 }
  0x2f   : > { %p661_p8 = scmp.ne.s32.totalorder %s955_s9, %s660_s18  ;;  %s665_s19 = scalar_lea.hbm %s1103_s2, 256 }
  0x30   : > { %p666_p10 = scmp.lt.u32.totalorder %s955_s9, %s1103_s2  ;;  %p667_p11 = scmp.lt.u32.totalorder %s665_s19, %s660_s18 }
  0x31   : > { %p663_p4 = pnand %p662_p13, %p661_p8  ;;  %p669_p0 = scmp.lt.u32.totalorder %s660_s18, %s955_s9 }
  0x32   : > { %p668_p5 = por %p667_p11, %p666_p10 }
  0x33   : > { %p664_p6 = pneg %p663_p4 }
  0x34   : > { %p670_p1 = por %p669_p0, %p668_p5 }
  0x36   : > { %p671_p9 = pnand %p670_p1, %p664_p6 }
  0x38   : > { %674 = shalt.err (!%p671_p9)
}
  0x39   : > { %s675_s27 = scalar_lea.vmem %s962_s17, 128  ;;  %s811_s16 = smov [#allocation8]  }
  0x3a   : > { %p676_p8 = scmp.ne.s32.totalorder %s962_s17, %s675_s27  ;;  %s680_s13 = sshll.u32 %s811_s16, 4  ;;  %s681_s13 = int_to_ptr.vmem [resolvable:$false] %s680_s13 }
  0x3b   : > { %s682_s1 = scalar_lea.vmem %s681_s13, 256  ;;  %p683_p3 = scmp.lt.s32.totalorder %s962_s17, %s681_s13 }
  0x3c   : > { %p678_p4 = pnand %p676_p8, %p662_p13  ;;  %p684_p10 = scmp.lt.s32.totalorder %s682_s1, %s675_s27 }
  0x3e   : > { %p679_p7 = pneg %p678_p4  ;;  %p685_p11 = por %p684_p10, %p683_p3 }
  0x40   : > { %p686_p5 = pnand %p685_p11, %p679_p7 }
  0x42   : > { %689 = shalt.err (!%p686_p5)
}
  0x43   : > { %s812_s18 = smov 32   ;;  %s813_s26 = smov 2  }
  0x44   : > { %581 = dma.hbm_to_vmem [thread:$0]  (!%p925_p2), %s955_s9, 128, %s962_s17, %s964_s15, %s812_s18, %s812_s18, %s813_s26  }
  0x45   : > { %257 = sbr.rel (%p915_p12) target bundleno = 153 (0x99), region = 36  ;;  %p1120_p13 = scmp.ne.s32.totalorder (!%p915_p12), %s1111_s28, 0 }
  0x4c   : > { %771 = dma.done.wait (%p1120_p13), [#allocation7], 16  }
  0x4d   : > { %773 = vsyncadd (%p1120_p13), [#allocation7], 4294967280  ;;  %s999_s19 = sand.u32 1, %s792_s21   ;;  %p1121_p3 = scmp.ne.s32.totalorder %s1113_s30, 0 }
  0x4e   : > { %s547_s29 = sshll.u32 %s999_s19, 3  ;;  %s264_s8 = scalar_lea.sflag [#allocation5], %s999_s19 }
  0x4f   : > { %s267_s12 = scalar_lea.vmem [#allocation8], %s547_s29 }
  0x50   : > { %775 = dma.done.wait (%p1121_p3), %s264_s8, 128  }
  0x51   : > { %777 = vsyncadd (%p1121_p3), %s264_s8, 4294967168 }
  0x52   : > { %272 = sfence }
  0x53   : > { %p307_p7 = scmp.lt.s32.totalorder %s800_s23, 1  ;;  %s319_s28 = sld [smem:[#allocation4]]  ;;  %v814_v0 = vmov 0.0   ;;  %v320_v1 = vld [vmem:[%s267_s12] sm:$0x3]  ;;  %vm349_vm0 = vcmask 1041408  }
  0x54   : > { %318 = vst [vmem:[#allocation2] sm:$0xff] %v814_v0  ;;  %s551_s11 = sld [smem:[#allocation4 + $0x1]]  ;;  %s553_s9 = sld [smem:[#allocation4 + $0x2]]  ;;  %v552_v2 = vld [vmem:[%s267_s12 + $0x2] sm:$0x3] }
  0x55   : > { %s555_s17 = sld [smem:[#allocation4 + $0x3]]  ;;  %v554_v3 = vld [vmem:[%s267_s12 + $0x4] sm:$0x3]  ;;  %s341_s27 = sld [smem:[#allocation3]]  ;;  %v556_v8 = vld [vmem:[%s267_s12 + $0x6] sm:$0x3] }
  0x56   : > { %s308_s15 = scalar_select %p307_p7, %s800_s23, 1 }
  0x57   : > { %s548_s16 = sshll.u32 %s999_s19, 1  ;;  %p1122_p2 = scmp.ne.s32.totalorder %s1114_s6, 0 }
  0x58   : > { %s550_s30 = sshll.u32 %s308_s15, 1  ;;  %s299_s26 = scalar_lea.vmem [#allocation9], %s548_s16 }
  0x59   : > { %v321_v4 = vstv %s319_s28  ;;  %s313_s18 = scalar_lea.vmem %s1104_s3, %s550_s30  ;;  %s384_s8 = sshll.u32 %s299_s26, 4  ;;  %s1016_s8 = int_to_ptr.vmem [resolvable:$true] %s384_s8 }
  0x5a   : > { %v322_v5 = vmul.f32 %v321_v4, %v320_v1  ;;  %v326_v6 = vstv %s551_s11  ;;  %v331_v7 = vstv %s553_s9  ;;  %s559_s28 = sshll.u32 %s800_s23, 5  ;;  %v345_v17 = vld [vmem:[%s313_s18] sm:$0x3]  ;;  %s690_s15 = scalar_lea.vmem %s1016_s8, 32 }
  0x5b   : > { %v327_v9 = vmul.f32 %v552_v2, %v326_v6  ;;  %v332_v10 = vmul.f32 %v554_v3, %v331_v7  ;;  %v336_v11 = vstv %s555_s17  ;;  %v342_v15 = vstv %s341_s27  ;;  %s1021_s9 = scalar_lea.hbm %s1105_s4, %s559_s28  ;;  %s365_s17 = scalar_lea.sflag [#allocation6], %s999_s19 }
  0x5c   : > { %v337_v12 = vmul.f32 %v556_v8, %v336_v11  ;;  %p691_p12 = scmp.ne.s32.totalorder %s1016_s8, %s690_s15  ;;  %s815_s27 = smov [#allocation9]  }
  0x5d   : > { %v338_v13 = vadd.f32 %v327_v9, %v322_v5  ;;  %s694_s16 = sshll.u32 %s815_s27, 4  ;;  %s695_s16 = int_to_ptr.vmem [resolvable:$false] %s694_s16 }
  0x5e   : > { %p692_p6 = pnand %p691_p12, %p1122_p2  ;;  %s696_s30 = scalar_lea.vmem %s695_s16, 64 }
  0x5f   : > { %v339_v14 = vadd.f32 %v338_v13, %v332_v10  ;;  %p697_p1 = scmp.lt.s32.totalorder %s1016_s8, %s695_s16  ;;  %p698_p9 = scmp.lt.s32.totalorder %s696_s30, %s690_s15 }
  0x60   : > { %p693_p0 = pneg %p692_p6 }
  0x61   : > { %v340_v16 = vadd.f32 %v339_v14, %v337_v12  ;;  %p699_p8 = por %p698_p9, %p697_p1 }
  0x63   : > { %v343_v18 = vadd.f32 %v342_v15, %v340_v16  ;;  %p700_p4 = pnand %p699_p8, %p693_p0 }
  0x65   : > { %v346_v19 = vsub.f32 %v343_v18, %v345_v17  ;;  %344 = vst [vmem:[%s299_s26] sm:$0x3] %v343_v18 }
  0x66   : > { %703 = shalt.err (!%p700_p4)
}
  0x67   : > { %s704_s13 = scalar_lea.hbm %s1021_s9, 32  ;;  %s708_s26 = scalar_lea.hbm %s1105_s4, 64 }
  0x68   : > { %p705_p10 = scmp.ne.s32.totalorder %s1021_s9, %s704_s13  ;;  %p709_p13 = scmp.lt.u32.totalorder %s1021_s9, %s1105_s4 }
  0x69   : > { %p710_p3 = scmp.lt.u32.totalorder %s708_s26, %s704_s13  ;;  %p712_p12 = scmp.lt.u32.totalorder %s704_s13, %s1021_s9 }
  0x6a   : > { %p706_p11 = pnand %p705_p10, %p1122_p2 }
  0x6b   : > { %p711_p7 = por %p710_p3, %p709_p13 }
  0x6c   : > { %p707_p5 = pneg %p706_p11 }
  0x6d   : > { %p713_p6 = por %p712_p12, %p711_p7 }
  0x6f   : > { %p714_p0 = pnand %p713_p6, %p707_p5 }
  0x71   : > { %717 = shalt.err (!%p714_p0)
}
  0x72   : > { %570 = dma.vmem_to_hbm [thread:$0]  (%p1122_p2), %s1016_s8, 32, %s1021_s9, %s365_s17   ;;  %v347_v20 = vmul.f32 %v346_v19, %v346_v19  ;;  %v348_v27 = vld [vmem:[#allocation2] sm:$0x1] }
  0x73   : > { %s306_s11 = scalar_lea.vmem [#allocation10], %s547_s29  ;;  %s560_s27 = sshll.u32 %s800_s23, 7 }
  0x74   : > { %v350_v21 = vsel %vm349_vm0, %v347_v20, 0.0  ;;  %s397_s15 = sshll.u32 %s306_s11, 4  ;;  %s1054_s17 = scalar_lea.hbm %s1106_s5, %s560_s27  ;;  %s1049_s15 = int_to_ptr.vmem [resolvable:$true] %s397_s15 }
  0x75   : > { %v351_v22 = vrot.slane %v350_v21, 4  ;;  %s370_s16 = scalar_lea.sflag [#allocation11], %s999_s19  ;;  %s718_s30 = scalar_lea.vmem %s1049_s15, 128 }
  0x76   : > { %p719_p1 = scmp.ne.s32.totalorder %s1049_s15, %s718_s30  ;;  %s816_s29 = smov [#allocation10]  }
  0x77   : > { %v352_v23 = vadd.f32 %v351_v22, %v350_v21  ;;  %s722_s23 = sshll.u32 %s816_s29, 4  ;;  %s723_s23 = int_to_ptr.vmem [resolvable:$false] %s722_s23 }
  0x78   : > { %p720_p9 = pnand %p719_p1, %p1122_p2  ;;  %s724_s13 = scalar_lea.vmem %s723_s23, 256 }
  0x79   : > { %v353_v24 = vrot.slane %v352_v23, 2  ;;  %p725_p4 = scmp.lt.s32.totalorder %s1049_s15, %s723_s23  ;;  %p726_p10 = scmp.lt.s32.totalorder %s724_s13, %s718_s30 }
  0x7a   : > { %p721_p8 = pneg %p720_p9 }
  0x7b   : > { %v354_v25 = vadd.f32 %v353_v24, %v352_v23  ;;  %p727_p11 = por %p726_p10, %p725_p4 }
  0x7d   : > { %v355_v26 = vrot.slane %v354_v25, 1  ;;  %p728_p5 = pnand %p727_p11, %p721_p8 }
  0x7f   : > { %v356_v28 = vadd.f32 %v355_v26, %v354_v25 }
  0x81   : > { %v357_v29 = vadd.f32 %v356_v28, %v348_v27 }
  0x83   : > { %358 = vst [vmem:[#allocation2] sm:$0x1] %v357_v29 }
  0x8a   : > { %v362_v30 = vld [vmem:[#allocation2] sm:$0xff] }
  0x8b   : > { %363 = vst [vmem:[%s306_s11] sm:$0xff] %v362_v30 }
  0x8c   : > { %731 = shalt.err (!%p728_p5)
}
  0x8d   : > { %s732_s19 = scalar_lea.hbm %s1054_s17, 128  ;;  %s736_s26 = scalar_lea.hbm %s1106_s5, 256 }
  0x8e   : > { %p733_p13 = scmp.ne.s32.totalorder %s1054_s17, %s732_s19  ;;  %p737_p12 = scmp.lt.u32.totalorder %s1054_s17, %s1106_s5 }
  0x8f   : > { %p738_p6 = scmp.lt.u32.totalorder %s736_s26, %s732_s19  ;;  %p740_p1 = scmp.lt.u32.totalorder %s732_s19, %s1054_s17 }
  0x90   : > { %p734_p3 = pnand %p733_p13, %p1122_p2 }
  0x91   : > { %p739_p0 = por %p738_p6, %p737_p12 }
  0x92   : > { %p735_p7 = pneg %p734_p3 }
  0x93   : > { %p741_p9 = por %p740_p1, %p739_p0 }
  0x95   : > { %p742_p8 = pnand %p741_p9, %p735_p7 }
  0x97   : > { %745 = shalt.err (!%p742_p8)
}
  0x98   : > { %571 = dma.vmem_to_hbm [thread:$0]  (%p1122_p2), %s1049_s15, 128, %s1054_s17, %s370_s16  }
  0x99 PF: > { %s409_s11 = sand.u32 1, %s788_s20   ;;  %p1123_p4 = scmp.ne.s32.totalorder %s1115_s7, 0 }
  0x9a   : > { %p1124_p10 = scmp.ge.s32.totalorder %s808_s25, 2  ;;  %s410_s27 = scalar_lea.sflag [#allocation6], %s409_s11 }
  0x9c   : > { %p583_p11 = pnand %p1124_p10, %p1123_p4 }
  0x9e   : > { %779 = dma.done.wait (!%p583_p11), %s410_s27, 32  }
  0x9f   : > { %781 = vsyncadd (!%p583_p11), %s410_s27, 4294967264  ;;  %s419_s8 = scalar_lea.sflag [#allocation11], %s409_s11 }
  0xa0   : > { %783 = dma.done.wait (!%p583_p11), %s419_s8, 128  }
  0xa1   : > { %785 = vsyncadd (!%p583_p11), %s419_s8, 4294967168  ;;  %s27_s25 = sadd.s32 1, %s808_s25   ;;  %s1125_s20 = smov %s792_s21 }
  0xa2   : > { %p24_p5 = scmp.ge.s32.totalorder %s27_s25, 4   ;;  %s1126_s21 = smov %s796_s22 }
  0xa3   : > { %s1127_s22 = smov %s960_s10  ;;  %s1128_s23 = smov %s804_s24 }
  0xa4   : > { %s1129_s24 = smov %s1131_s14  ;;  %26 = sbr.rel (!%p24_p5) target bundleno = 11 (0xb), region = 117 }
  0xab   :  { %424 = vsyncpa [#allocation5], 1 }
  0xac   :  { %426 = vsyncpa [#allocation5 + $0x1], 1 }
  0xad   :  { %427 = vsyncpa [#allocation6], 1 }
  0xae   :  { %429 = vsyncpa [#allocation6 + $0x1], 1 }
  0xaf   :  { %430 = vsyncpa [#allocation11], 1 }
  0xb0   :  { %432 = vsyncpa [#allocation11 + $0x1], 1 }
  0xb1   :  { %433 = vsyncpa [#allocation7], 1 }
  0xb2   :  { %435 = vsyncpa [#allocation7 + $0x1], 1 }

</bundles_post_ra>
